<compile_context>
chip_gen: v6e
topology: v6e:2x2x1
jax: 0.10.0
libtpu: 0.0.40
codegen_flags: <defaults>
</compile_context>

<pallas_src>
import jax
import jax.numpy as jnp
from jax.experimental import pallas as pl
from jax.experimental.pallas import tpu as pltpu

# --- small, forward-consistent shapes ----------------------------------------
B = 16                    # batch of im_features
D_IN = 512                # im_features dim (fixed by nn.Linear(512, 512 // 16))
HIDDEN = D_IN // 16       # 32
CTX_DIM = 128             # ctx_dim = clip_model.ln_final.weight.shape[0] (small)
N_CTX = 16                # default n_ctx
SEQ_LEN = 32              # tokenizer context length (CLIP uses 77; small here)
VOCAB = 100


def prompt_learner_forward(im_features, w1, b1, w2, b2, ctx, embedding,
                           *, max_rows_per_step=64):
    """PromptLearner.forward (token_position='front').

    Returns prompts (B, SEQ, CTX_DIM).  The embedding buffer is aliased into
    the output and must be treated as consumed by the caller.  The eval-mode
    extra output is ctx_shifted == prompts[:, 1:1+n_ctx, :].
    """
    b, d_in = im_features.shape
    n_ctx, ctx_dim = ctx.shape
    _, seq_len, _ = embedding.shape

    # Grid policy: one step for small batches (serial-loop overhead dominates
    # on v5e/v6e); exactly two "parallel" steps for large batches (v7x 2-TC).
    num_steps = 1 if b <= max_rows_per_step else 2
    assert b % num_steps == 0, "batch must split evenly across grid steps"
    b_tile = b // num_steps
    if num_steps > 1:
        assert b_tile % 8 == 0, "per-step batch tile must be sublane-aligned"

    def kernel(x_ref, w1_ref, b1_ref, w2_ref, b2_ref, ctx_ref,
               emb_hbm, prompts_hbm, cs_vmem, sem):
        # emb_hbm is the same HBM buffer as prompts_hbm (aliased); prefix and
        # suffix rows are already in place, so it is never read.
        del emb_hbm
        i = pl.program_id(0)

        # meta_net: Linear(512, 32) -> ReLU -> Linear(32, ctx_dim), f32 acc.
        x = x_ref[...]                                                 # (bt, D_IN)
        h = jnp.dot(x, w1_ref[...],
                    preferred_element_type=jnp.float32) + b1_ref[...]
        h = jnp.maximum(h, 0.0)                                        # (bt, HIDDEN)
        bias = jnp.dot(h, w2_ref[...],
                       preferred_element_type=jnp.float32) + b2_ref[...]

        # ctx_shifted = ctx.unsqueeze(0).expand(bt,-1,-1) + bias.unsqueeze(1)
        cs_vmem[...] = ctx_ref[...][None, :, :] + bias[:, None, :]     # (bt, n_ctx, ctx_dim)

        # Write ONLY the ctx window into the aliased prompts buffer
        # (seq rows 1 : 1+n_ctx of this batch tile).
        cp = pltpu.make_async_copy(
            cs_vmem,
            prompts_hbm.at[pl.ds(i * b_tile, b_tile), pl.ds(1, n_ctx), :],
            sem)
        cp.start()
        cp.wait()

    def inv(shape):  # grid-invariant block (weights / biases / ctx)
        return pl.BlockSpec(shape, lambda i: (0,) * len(shape))

    return pl.pallas_call(
        kernel,
        grid=(num_steps,),
        in_specs=[
            pl.BlockSpec((b_tile, d_in), lambda i: (i, 0)),   # im_features
            inv((d_in, HIDDEN)),                              # linear1.weight (transposed, x@W)
            inv((1, HIDDEN)),                                 # linear1.bias
            inv((HIDDEN, ctx_dim)),                           # linear2.weight (transposed)
            inv((1, ctx_dim)),                                # linear2.bias
            inv((n_ctx, ctx_dim)),                            # self.ctx
            pl.BlockSpec(memory_space=pl.ANY),                # token embedding (raw HBM, aliased)
        ],
        out_specs=pl.BlockSpec(memory_space=pl.ANY),          # prompts (raw HBM, aliased)
        out_shape=jax.ShapeDtypeStruct((b, seq_len, ctx_dim), embedding.dtype),
        scratch_shapes=[
            pltpu.VMEM((b_tile, n_ctx, ctx_dim), jnp.float32),
            pltpu.SemaphoreType.DMA,
        ],
        input_output_aliases={6: 0},   # embedding buffer is reused for prompts
        compiler_params=pltpu.CompilerParams(
            dimension_semantics=("parallel",)),
    )(im_features, w1, b1, w2, b2, ctx, embedding)


if __name__ == "__main__":
    key = jax.random.PRNGKey(0)
    k = jax.random.split(key, 8)

    # Deterministic synthetic parameters (shapes from __init__).  PyTorch's
    # nn.Linear stores (out, in); the transposed (in, out) layout is used here
    # so the kernel computes x @ W directly.
    w1 = jax.random.normal(k[0], (D_IN, HIDDEN), jnp.float32) * 0.02
    b1 = jax.random.normal(k[1], (1, HIDDEN), jnp.float32) * 0.02
    w2 = jax.random.normal(k[2], (HIDDEN, CTX_DIM), jnp.float32) * 0.02
    b2 = jax.random.normal(k[3], (1, CTX_DIM), jnp.float32) * 0.02
    ctx = jax.random.normal(k[4], (N_CTX, CTX_DIM), jnp.float32) * 0.02

    # TODO(synk): clip.tokenize / clip_model.token_embedding have no Pallas
    # equivalent; simulated with deterministic token ids + an embedding-table
    # gather in plain JAX (glue).  token_position='middle' branch not implemented.
    token_table = jax.random.normal(k[5], (VOCAB, CTX_DIM), jnp.float32) * 0.02
    tokenized_prompts = jax.random.randint(k[6], (B, SEQ_LEN), 0, VOCAB,
                                           dtype=jnp.int32)
    embedding = jnp.take(token_table, tokenized_prompts, axis=0)  # (B, SEQ, CTX_DIM)

    im_features = jax.random.normal(k[7], (B, D_IN), jnp.float32)

    # Pure-JAX reference (computed BEFORE the kernel call: the embedding buffer
    # is aliased into the kernel output and must be treated as consumed).
    h_ref = jnp.maximum(im_features @ w1 + b1, 0.0)
    bias_ref = h_ref @ w2 + b2
    ctx_shifted_ref = ctx[None, :, :] + bias_ref[:, None, :]
    prompts_ref = jnp.concatenate(
        [embedding[:, :1, :], ctx_shifted_ref, embedding[:, 1 + N_CTX:, :]], axis=1)
    prompts_ref = jax.block_until_ready(prompts_ref)

    prompts = prompt_learner_forward(im_features, w1, b1, w2, b2, ctx, embedding)
    prompts = jax.block_until_ready(prompts)
    ctx_shifted = prompts[:, 1:1 + N_CTX, :]   # eval-mode extra output (a view)

    assert prompts.shape == (B, SEQ_LEN, CTX_DIM)
    assert ctx_shifted.shape == (B, N_CTX, CTX_DIM)
    assert jnp.allclose(prompts, prompts_ref, atol=1e-5, rtol=1e-5)
    assert jnp.allclose(ctx_shifted, ctx_shifted_ref, atol=1e-5, rtol=1e-5)

    print("KERNEL_OK")
</pallas_src>

<mosaic_0001>
module attributes {stable_mosaic.version = 11 : i64} {
  func.func @kernel(%arg0: i32, %arg1: memref<16x512xf32, #tpu.memory_space<vmem>>, %arg2: memref<512x32xf32, #tpu.memory_space<vmem>>, %arg3: memref<1x32xf32, #tpu.memory_space<vmem>>, %arg4: memref<32x128xf32, #tpu.memory_space<vmem>>, %arg5: memref<1x128xf32, #tpu.memory_space<vmem>>, %arg6: memref<16x128xf32, #tpu.memory_space<vmem>>, %arg7: memref<16x32x128xf32, #tpu.memory_space<any>>, %arg8: memref<16x32x128xf32, #tpu.memory_space<any>>, %arg9: memref<16x16x128xf32, #tpu.memory_space<vmem>>, %arg10: memref<!tpu.dma_semaphore, #tpu.memory_space<semaphore_mem>>) attributes {dimension_semantics = [#tpu.dimension_semantics<parallel>], iteration_bounds = array<i64: 1>, scalar_prefetch = 0 : i64, scratch_operands = 2 : i64, tpu.core_type = #tpu.core_type<tc>, window_params = [{transform_indices = @transform_0, window_bounds = array<i64: 16, 512>}, {pipeline_mode = #tpu.pipeline_mode<synchronous>, transform_indices = @transform_1, window_bounds = array<i64: 512, 32>}, {pipeline_mode = #tpu.pipeline_mode<synchronous>, transform_indices = @transform_2, window_bounds = array<i64: 1, 32>}, {pipeline_mode = #tpu.pipeline_mode<synchronous>, transform_indices = @transform_3, window_bounds = array<i64: 32, 128>}, {pipeline_mode = #tpu.pipeline_mode<synchronous>, transform_indices = @transform_4, window_bounds = array<i64: 1, 128>}, {pipeline_mode = #tpu.pipeline_mode<synchronous>, transform_indices = @transform_5, window_bounds = array<i64: 16, 128>}, {}, {}]} {
    %c0 = arith.constant 0 : index
    %c0_0 = arith.constant 0 : index
    %0 = vector.load %arg1[%c0, %c0_0] : memref<16x512xf32, #tpu.memory_space<vmem>>, vector<16x512xf32>
    %c0_1 = arith.constant 0 : index
    %c0_2 = arith.constant 0 : index
    %1 = vector.load %arg2[%c0_1, %c0_2] : memref<512x32xf32, #tpu.memory_space<vmem>>, vector<512x32xf32>
    %cst = arith.constant dense<0.000000e+00> : vector<16x32xf32>
    %2 = tpu.matmul %0, %1, %cst {dimension_numbers = #tpu.dot_dimension_numbers<[1], [0], [0], [1], [0, 0, 1, 1], [], []>} : vector<16x512xf32>, vector<512x32xf32>, vector<16x32xf32> -> vector<16x32xf32>
    %c0_3 = arith.constant 0 : index
    %c0_4 = arith.constant 0 : index
    %3 = vector.load %arg3[%c0_3, %c0_4] : memref<1x32xf32, #tpu.memory_space<vmem>>, vector<1x32xf32>
    %4 = vector.broadcast %3 : vector<1x32xf32> to vector<16x32xf32>
    %5 = arith.addf %2, %4 : vector<16x32xf32>
    %cst_5 = arith.constant 0.000000e+00 : f32
    %6 = vector.broadcast %cst_5 : f32 to vector<16x32xf32>
    %7 = arith.maximumf %5, %6 : vector<16x32xf32>
    %c0_6 = arith.constant 0 : index
    %c0_7 = arith.constant 0 : index
    %8 = vector.load %arg4[%c0_6, %c0_7] : memref<32x128xf32, #tpu.memory_space<vmem>>, vector<32x128xf32>
    %cst_8 = arith.constant dense<0.000000e+00> : vector<16x128xf32>
    %9 = tpu.matmul %7, %8, %cst_8 {dimension_numbers = #tpu.dot_dimension_numbers<[1], [0], [0], [1], [0, 0, 1, 1], [], []>} : vector<16x32xf32>, vector<32x128xf32>, vector<16x128xf32> -> vector<16x128xf32>
    %c0_9 = arith.constant 0 : index
    %c0_10 = arith.constant 0 : index
    %10 = vector.load %arg5[%c0_9, %c0_10] : memref<1x128xf32, #tpu.memory_space<vmem>>, vector<1x128xf32>
    %11 = vector.broadcast %10 : vector<1x128xf32> to vector<16x128xf32>
    %12 = arith.addf %9, %11 : vector<16x128xf32>
    %c0_11 = arith.constant 0 : index
    %c0_12 = arith.constant 0 : index
    %13 = vector.load %arg6[%c0_11, %c0_12] : memref<16x128xf32, #tpu.memory_space<vmem>>, vector<16x128xf32>
    %14 = vector.shape_cast %13 : vector<16x128xf32> to vector<1x16x128xf32>
    %15 = vector.shape_cast %12 : vector<16x128xf32> to vector<16x1x128xf32>
    %16 = vector.broadcast %14 : vector<1x16x128xf32> to vector<16x16x128xf32>
    %17 = vector.broadcast %15 : vector<16x1x128xf32> to vector<16x16x128xf32>
    %18 = arith.addf %16, %17 : vector<16x16x128xf32>
    %c0_13 = arith.constant 0 : index
    %c0_14 = arith.constant 0 : index
    %c0_15 = arith.constant 0 : index
    %19 = vector.load %arg9[%c0_13, %c0_14, %c0_15] : memref<16x16x128xf32, #tpu.memory_space<vmem>>, vector<16x16x128xf32>
    tpu.vector_store %arg9[%c0_13, %c0_14, %c0_15], %18 {strides = array<i32>} : memref<16x16x128xf32, #tpu.memory_space<vmem>>, vector<16x16x128xf32>,
    %c16_i32 = arith.constant 16 : i32
    %20 = arith.muli %arg0, %c16_i32 : i32
    %c1_i32 = arith.constant 1 : i32
    %c0_i32 = arith.constant 0 : i32
    %21 = tpu.memref_slice %arg8[%20, %c1_i32, %c0_i32] : memref<16x32x128xf32, #tpu.memory_space<any>> -> memref<16x16x128xf32, #tpu.memory_space<any>>
    tpu.enqueue_dma source(%arg9 : memref<16x16x128xf32, #tpu.memory_space<vmem>>) target(%21 : memref<16x16x128xf32, #tpu.memory_space<any>>) target_semaphore(%arg10 : memref<!tpu.dma_semaphore, #tpu.memory_space<semaphore_mem>>)
    %c1_i32_16 = arith.constant 1 : i32
    %c0_i32_17 = arith.constant 0 : i32
    %22 = tpu.memref_slice %arg8[%20, %c1_i32_16, %c0_i32_17] : memref<16x32x128xf32, #tpu.memory_space<any>> -> memref<16x16x128xf32, #tpu.memory_space<any>>
    tpu.wait_dma2 semaphore(%arg10 : memref<!tpu.dma_semaphore, #tpu.memory_space<semaphore_mem>>) src(%arg9 : memref<16x16x128xf32, #tpu.memory_space<vmem>>) dst(%22 : memref<16x16x128xf32, #tpu.memory_space<any>>)
    return
  }
  func.func @transform_0(%arg0: i32) -> (i32, i32) {
    %c0_i32 = arith.constant 0 : i32
    %c0_i32_0 = arith.constant 0 : i32
    return %arg0, %c0_i32 : i32, i32
  }
  func.func @transform_1(%arg0: i32) -> (i32, i32) {
    %c0_i32 = arith.constant 0 : i32
    %c0_i32_0 = arith.constant 0 : i32
    %c0_i32_1 = arith.constant 0 : i32
    return %c0_i32, %c0_i32_0 : i32, i32
  }
  func.func @transform_2(%arg0: i32) -> (i32, i32) {
    %c0_i32 = arith.constant 0 : i32
    %c0_i32_0 = arith.constant 0 : i32
    %c0_i32_1 = arith.constant 0 : i32
    return %c0_i32, %c0_i32_0 : i32, i32
  }
  func.func @transform_3(%arg0: i32) -> (i32, i32) {
    %c0_i32 = arith.constant 0 : i32
    %c0_i32_0 = arith.constant 0 : i32
    %c0_i32_1 = arith.constant 0 : i32
    return %c0_i32, %c0_i32_0 : i32, i32
  }
  func.func @transform_4(%arg0: i32) -> (i32, i32) {
    %c0_i32 = arith.constant 0 : i32
    %c0_i32_0 = arith.constant 0 : i32
    %c0_i32_1 = arith.constant 0 : i32
    return %c0_i32, %c0_i32_0 : i32, i32
  }
  func.func @transform_5(%arg0: i32) -> (i32, i32) {
    %c0_i32 = arith.constant 0 : i32
    %c0_i32_0 = arith.constant 0 : i32
    %c0_i32_1 = arith.constant 0 : i32
    return %c0_i32, %c0_i32_0 : i32, i32
  }
}

</mosaic_0001>

<bundles_post_ra>
// kernel: tpu_custom_call.1
= control target key start
LH: loop header
LB: loop body
LE: loop exit
PB: predicated region body
PF: predicated region fallthrough
CT: control target
= control target key end

     0   :  { %vm266_vm0 = vcmask 261120   ;;  %s1099_s1 = inlined_call_operand.vmem [shape: f32[512,32], index: 1, kind: input, shape index: {}]   ;;  %s1100_s6 = inlined_call_operand.hbm [shape: f32[16,32,128], index: 6, kind: input, shape index: {}, may-alias: {6,7}]   ;;  %s1101_s0 = inlined_call_operand.vmem [shape: f32[16,512], index: 0, kind: input, shape index: {}]   ;;  %s1102_s3 = inlined_call_operand.vmem [shape: f32[32,128], index: 3, kind: input, shape index: {}]   ;;  %s1103_s2 = inlined_call_operand.vmem [shape: f32[1,32], index: 2, kind: input, shape index: {}]   ;;  %s1104_s4 = inlined_call_operand.vmem [shape: f32[1,128], index: 4, kind: input, shape index: {}]   ;;  %s1105_s5 = inlined_call_operand.vmem [shape: f32[16,128], index: 5, kind: input, shape index: {}]   ;;  %s1106_s7 = inlined_call_operand.hbm [shape: f32[16,32,128], index: 7, kind: output, shape index: {}, may-alias: {6,7}]  }
   0x1   :  { %v63_v0 = vld [vmem:[%s1099_s1 + $0xf8] sm:$0xff]  ;;  %v62_v4 = vld [vmem:[%s1099_s1 + $0xf0] sm:$0xff]  ;;  %v61_v8 = vld [vmem:[%s1099_s1 + $0xe8] sm:$0xff]  ;;  %s614_s14 = scalar_lea.hbm %s1106_s7, 16 }
   0x2   :  { %v95_v1 = vld [vmem:[%s1099_s1 + $0x1f8] sm:$0xff]  ;;  %620 = vmatprep.subr.mxu0 %v63_v0  ;;  %v94_v5 = vld [vmem:[%s1099_s1 + $0x1f0] sm:$0xff]  ;;  %v93_v9 = vld [vmem:[%s1099_s1 + $0x1e8] sm:$0xff] }
   0x3   :  { %v47_v2 = vld [vmem:[%s1099_s1 + $0x78] sm:$0xff]  ;;  %658 = vmatprep.subr.mxu1 %v95_v1  ;;  %v46_v6 = vld [vmem:[%s1099_s1 + $0x70] sm:$0xff]  ;;  %v45_v10 = vld [vmem:[%s1099_s1 + $0x68] sm:$0xff] }
   0x4   :  { %v79_v3 = vld [vmem:[%s1099_s1 + $0x178] sm:$0xff]  ;;  %621 = vmatpush3.msra.mxu0 %v47_v2  ;;  %v78_v7 = vld [vmem:[%s1099_s1 + $0x170] sm:$0xff]  ;;  %v77_v11 = vld [vmem:[%s1099_s1 + $0x168] sm:$0xff] }
   0x5   :  { %659 = vmatpush3.msra.mxu1 %v79_v3  ;;  %622 = vmatprep.subr.mxu0 %v62_v4  ;;  %v60_v12 = vld [vmem:[%s1099_s1 + $0xe0] sm:$0xff]  ;;  %v59_v16 = vld [vmem:[%s1099_s1 + $0xd8] sm:$0xff]  ;;  %v58_v20 = vld [vmem:[%s1099_s1 + $0xd0] sm:$0xff] }
   0x6   :  { %660 = vmatprep.subr.mxu1 %v94_v5  ;;  %623 = vmatpush3.msra.mxu0 %v46_v6  ;;  %v92_v13 = vld [vmem:[%s1099_s1 + $0x1e0] sm:$0xff]  ;;  %v91_v17 = vld [vmem:[%s1099_s1 + $0x1d8] sm:$0xff]  ;;  %v90_v21 = vld [vmem:[%s1099_s1 + $0x1d0] sm:$0xff] }
   0x7   :  { %661 = vmatpush3.msra.mxu1 %v78_v7  ;;  %624 = vmatprep.subr.mxu0 %v61_v8  ;;  %v44_v14 = vld [vmem:[%s1099_s1 + $0x60] sm:$0xff]  ;;  %v43_v18 = vld [vmem:[%s1099_s1 + $0x58] sm:$0xff]  ;;  %v42_v22 = vld [vmem:[%s1099_s1 + $0x50] sm:$0xff] }
   0x8   :  { %662 = vmatprep.subr.mxu1 %v93_v9  ;;  %v76_v15 = vld [vmem:[%s1099_s1 + $0x160] sm:$0xff]  ;;  %625 = vmatpush3.msra.mxu0 %v45_v10  ;;  %v75_v19 = vld [vmem:[%s1099_s1 + $0x158] sm:$0xff]  ;;  %v74_v23 = vld [vmem:[%s1099_s1 + $0x150] sm:$0xff] }
   0x9   :  { %663 = vmatpush3.msra.mxu1 %v77_v11  ;;  %626 = vmatprep.subr.mxu0 %v60_v12  ;;  %v57_v24 = vld [vmem:[%s1099_s1 + $0xc8] sm:$0xff]  ;;  %v56_v28 = vld [vmem:[%s1099_s1 + $0xc0] sm:$0xff]  ;;  %v55_v32 = vld [vmem:[%s1099_s1 + $0xb8] sm:$0xff] }
   0xa   :  { %664 = vmatprep.subr.mxu1 %v92_v13  ;;  %627 = vmatpush3.msra.mxu0 %v44_v14  ;;  %v89_v25 = vld [vmem:[%s1099_s1 + $0x1c8] sm:$0xff]  ;;  %v88_v29 = vld [vmem:[%s1099_s1 + $0x1c0] sm:$0xff]  ;;  %v87_v33 = vld [vmem:[%s1099_s1 + $0x1b8] sm:$0xff] }
   0xb   :  { %665 = vmatpush3.msra.mxu1 %v76_v15  ;;  %628 = vmatprep.subr.mxu0 %v59_v16  ;;  %v41_v26 = vld [vmem:[%s1099_s1 + $0x48] sm:$0xff]  ;;  %v40_v30 = vld [vmem:[%s1099_s1 + $0x40] sm:$0xff]  ;;  %v39_v34 = vld [vmem:[%s1099_s1 + $0x38] sm:$0xff] }
   0xc   :  { %666 = vmatprep.subr.mxu1 %v91_v17  ;;  %629 = vmatpush3.msra.mxu0 %v43_v18  ;;  %v73_v27 = vld [vmem:[%s1099_s1 + $0x148] sm:$0xff]  ;;  %v72_v31 = vld [vmem:[%s1099_s1 + $0x140] sm:$0xff]  ;;  %v71_v35 = vld [vmem:[%s1099_s1 + $0x138] sm:$0xff] }
   0xd   :  { %667 = vmatpush3.msra.mxu1 %v75_v19  ;;  %630 = vmatprep.subr.mxu0 %v58_v20  ;;  %v54_v36 = vld [vmem:[%s1099_s1 + $0xb0] sm:$0xff]  ;;  %v53_v40 = vld [vmem:[%s1099_s1 + $0xa8] sm:$0xff]  ;;  %v52_v44 = vld [vmem:[%s1099_s1 + $0xa0] sm:$0xff] }
   0xe   :  { %668 = vmatprep.subr.mxu1 %v90_v21  ;;  %631 = vmatpush3.msra.mxu0 %v42_v22  ;;  %v86_v37 = vld [vmem:[%s1099_s1 + $0x1b0] sm:$0xff]  ;;  %v85_v41 = vld [vmem:[%s1099_s1 + $0x1a8] sm:$0xff]  ;;  %v84_v45 = vld [vmem:[%s1099_s1 + $0x1a0] sm:$0xff] }
   0xf   :  { %669 = vmatpush3.msra.mxu1 %v74_v23  ;;  %632 = vmatprep.subr.mxu0 %v57_v24  ;;  %v38_v38 = vld [vmem:[%s1099_s1 + $0x30] sm:$0xff]  ;;  %v37_v42 = vld [vmem:[%s1099_s1 + $0x28] sm:$0xff]  ;;  %v36_v46 = vld [vmem:[%s1099_s1 + $0x20] sm:$0xff] }
  0x10   :  { %670 = vmatprep.subr.mxu1 %v89_v25  ;;  %633 = vmatpush3.msra.mxu0 %v41_v26  ;;  %v70_v39 = vld [vmem:[%s1099_s1 + $0x130] sm:$0xff]  ;;  %v69_v43 = vld [vmem:[%s1099_s1 + $0x128] sm:$0xff]  ;;  %v68_v47 = vld [vmem:[%s1099_s1 + $0x120] sm:$0xff] }
  0x11   :  { %671 = vmatpush3.msra.mxu1 %v73_v27  ;;  %634 = vmatprep.subr.mxu0 %v56_v28  ;;  %v51_v48 = vld [vmem:[%s1099_s1 + $0x98] sm:$0xff]  ;;  %v50_v52 = vld [vmem:[%s1099_s1 + $0x90] sm:$0xff]  ;;  %v49_v56 = vld [vmem:[%s1099_s1 + $0x88] sm:$0xff] }
  0x12   :  { %672 = vmatprep.subr.mxu1 %v88_v29  ;;  %635 = vmatpush3.msra.mxu0 %v40_v30  ;;  %v83_v49 = vld [vmem:[%s1099_s1 + $0x198] sm:$0xff]  ;;  %v82_v53 = vld [vmem:[%s1099_s1 + $0x190] sm:$0xff]  ;;  %v81_v57 = vld [vmem:[%s1099_s1 + $0x188] sm:$0xff] }
  0x13   :  { %673 = vmatpush3.msra.mxu1 %v72_v31  ;;  %636 = vmatprep.subr.mxu0 %v55_v32  ;;  %v35_v50 = vld [vmem:[%s1099_s1 + $0x18] sm:$0xff]  ;;  %v34_v54 = vld [vmem:[%s1099_s1 + $0x10] sm:$0xff]  ;;  %v33_v58 = vld [vmem:[%s1099_s1 + $0x8] sm:$0xff]  ;;  %v743_v31 = vmov 1966171168  }
  0x14   :  { %674 = vmatprep.subr.mxu1 %v87_v33  ;;  %637 = vmatpush3.msra.mxu0 %v39_v34  ;;  %v67_v51 = vld [vmem:[%s1099_s1 + $0x118] sm:$0xff]  ;;  %v66_v55 = vld [vmem:[%s1099_s1 + $0x110] sm:$0xff]  ;;  %v65_v59 = vld [vmem:[%s1099_s1 + $0x108] sm:$0xff]  ;;  %v354_v32 = vunpack.c.l.s4 %v743_v31  ;;  %v356_v33 = vlaneseq }
  0x15   :  { %675 = vmatpush3.msra.mxu1 %v71_v35  ;;  %638 = vmatprep.subr.mxu0 %v54_v36  ;;  %v48_v60 = vld [vmem:[%s1099_s1 + $0x80] sm:$0xff]  ;;  %v25_v63 = vld [vmem:[%s1101_s0 + $0x8] sm:$0xff]  ;;  %v27_v1 = vld [vmem:[%s1101_s0 + $0x18] sm:$0xff] }
  0x16   :  { %676 = vmatprep.subr.mxu1 %v86_v37  ;;  %639 = vmatpush3.msra.mxu0 %v38_v38  ;;  %v80_v61 = vld [vmem:[%s1099_s1 + $0x180] sm:$0xff]  ;;  %v26_v3 = vld [vmem:[%s1101_s0 + $0x10] sm:$0xff]  ;;  %v29_v4 = vld [vmem:[%s1101_s0 + $0x28] sm:$0xff]  ;;  %v355_v34 = vunpack.c.0.s8 %v354_v32  ;;  %v357_v35 = vshrl.u32 %v356_v33, 7 }
  0x17   :  { %677 = vmatpush3.msra.mxu1 %v70_v39  ;;  %640 = vmatprep.subr.mxu0 %v53_v40  ;;  %v32_v62 = vld [vmem:[%s1099_s1] sm:$0xff]  ;;  %v31_v5 = vld [vmem:[%s1101_s0 + $0x38] sm:$0xff]  ;;  %v30_v7 = vld [vmem:[%s1101_s0 + $0x30] sm:$0xff] }
  0x18   :  { %678 = vmatprep.subr.mxu1 %v85_v41  ;;  %641 = vmatpush3.msra.mxu0 %v37_v42  ;;  %v64_v0 = vld [vmem:[%s1099_s1 + $0x100] sm:$0xff]  ;;  %v258_v8 = vld [vmem:[%s1102_s3 + $0x18] sm:$0xff]  ;;  %v257_v9 = vld [vmem:[%s1102_s3 + $0x10] sm:$0xff]  ;;  %v1022_v37 = vsub.s32 %v355_v34, %v357_v35 }
  0x19   :  { %679 = vmatpush3.msra.mxu1 %v69_v43  ;;  %642 = vmatprep.subr.mxu0 %v52_v44  ;;  %v24_v2 = vld [vmem:[%s1101_s0] sm:$0xff]  ;;  %v256_v10 = vld [vmem:[%s1102_s3 + $0x8] sm:$0xff]  ;;  %v1025_v44 = vsub.s32 0, %v357_v35 }
  0x1a   :  { %680 = vmatprep.subr.mxu1 %v84_v45  ;;  %643 = vmatpush3.msra.mxu0 %v36_v46  ;;  %v28_v6 = vld [vmem:[%s1101_s0 + $0x20] sm:$0xff] }
  0x1b   :  { %681 = vmatpush3.msra.mxu1 %v68_v47  ;;  %644 = vmatprep.subr.mxu0 %v51_v48  ;;  %v255_v11 = vld [vmem:[%s1102_s3] sm:$0xff] }
  0x1c   :  { %682 = vmatprep.subr.mxu1 %v83_v49  ;;  %645 = vmatpush3.msra.mxu0 %v35_v50  ;;  %v615_v14 = vld [vmem:[%s1103_s2] ss:$0 sm:$0xff] }
  0x1d   :  { %683 = vmatpush3.msra.mxu1 %v67_v51  ;;  %646 = vmatprep.subr.mxu0 %v50_v52  ;;  %v616_v36 = vld [vmem:[%s1104_s4] ss:$0 sm:$0xff]  ;;  %v1038_v51 = vld [vmem:[%s1105_s5 + $0x8] sm:$0xff] }
  0x1e   :  { %684 = vmatprep.subr.mxu1 %v82_v53  ;;  %647 = vmatpush3.msra.mxu0 %v34_v54  ;;  %v1033_v50 = vld [vmem:[%s1105_s5] sm:$0xff]  ;;  %s744_s5 = smov [#allocation2]  }
  0x1f   :  { %685 = vmatpush3.msra.mxu1 %v66_v55  ;;  %648 = vmatprep.subr.mxu0 %v49_v56  ;;  %s600_s11 = sshll.u32 %s744_s5, 4  ;;  %s601_s11 = int_to_ptr.vmem [resolvable:$true] %s600_s11 }
  0x20   :  { %686 = vmatprep.subr.mxu1 %v81_v57  ;;  %649 = vmatpush3.msra.mxu0 %v33_v58  ;;  %s718_s15 = scalar_lea.vmem %s601_s11, 4096  ;;  %p723_p1 = scmp.lt.s32.totalorder %s601_s11, %s601_s11 }
  0x21   :  { %687 = vmatpush3.msra.mxu1 %v65_v59  ;;  %650 = vmatprep.subr.mxu0 %v48_v60  ;;  %p719_p0 = scmp.ne.s32.totalorder %s601_s11, %s718_s15  ;;  %p724_p2 = scmp.lt.s32.totalorder %s718_s15, %s718_s15 }
  0x22   :  { %688 = vmatprep.subr.mxu1 %v80_v61  ;;  %651 = vmatpush3.msra.mxu0 %v32_v62 }
  0x23   :  { %167 = vmatprep.mubr.f32.mxu0 %v25_v63  ;;  %689 = vmatpush3.msra.mxu1 %v64_v0  ;;  %p725_p3 = por %p724_p2, %p723_p1 }
  0x24   :  { %242 = vmatprep.mubr.f32.mxu1 %v27_v1  ;;  %168 = vmatmul.mubr.f32.vlgmr.msra.gmra.mxu0 %v24_v2 }
  0x25   :  { %243 = vmatmul.mubr.f32.vlgmr.msra.gmra.mxu1 %v26_v3  ;;  %172 = vmatprep.mubr.f32.mxu0 %v29_v4  ;;  %p726_p4 = pnand %p725_p3, %p719_p0 }
  0x26   :  { %247 = vmatprep.mubr.f32.mxu1 %v31_v5  ;;  %702 = vmatprep.subr.mxu0 %v258_v8 }
  0x27   :  { %703 = vmatpush3.msra.mxu0 %v258_v8 }
  0x28   :  { %173 = vmatmul.mubr.f32.gmra.mxu0 %v28_v6  ;;  %704 = vmatprep.subr.mxu0 %v257_v9 }
  0x29   :  { %248 = vmatmul.mubr.f32.gmra.mxu1 %v30_v7  ;;  %705 = vmatpush3.msra.mxu0 %v257_v9 }
  0x2a   :  { %706 = vmatprep.subr.mxu0 %v256_v10 }
  0x2b   :  { %707 = vmatpush3.msra.mxu0 %v256_v10 }
  0x2c   :  { %708 = vmatprep.subr.mxu0 %v255_v11 }
  0x2d   :  { %709 = vmatpush3.msra.mxu0 %v255_v11 }
  0xe4   :  { %v652_v12 = vpop.f32.mrf.mxu0 }
  0xe5   :  { %v690_v13 = vpop.f32.mrf.mxu1 }
  0xe6   :  { %v653_v15 = vpop.f32.mrf.mxu0 }
  0xe7   :  { %v691_v16 = vpop.f32.mrf.mxu1  ;;  %v654_v17 = vadd.f32 %v653_v15, %v652_v12 }
  0xe8   :  { %v655_v18 = vpop.f32.mrf.mxu0  ;;  %v692_v21 = vadd.f32 %v691_v16, %v690_v13 }
  0xe9   :  { %v693_v19 = vpop.f32.mrf.mxu1  ;;  %v170_v20 = vadd.f32 %v654_v17, %v615_v14 }
  0xea   :  { %v656_v22 = vpop.f32.mrf.mxu0 }
  0xeb   :  { %v694_v23 = vpop.f32.mrf.mxu1  ;;  %v245_v24 = vadd.f32 %v692_v21, %v170_v20  ;;  %v657_v25 = vadd.f32 %v656_v22, %v655_v18 }
  0xec   :  { %v695_v28 = vadd.f32 %v694_v23, %v693_v19 }
  0xed   :  { %v253_v26 = vmax.f32 %v245_v24, 0.0  ;;  %v175_v27 = vadd.f32 %v657_v25, %v615_v14 }
  0xef   :  { %v250_v29 = vadd.f32 %v695_v28, %v175_v27  ;;  %710 = vmatprep.mubr.msk.f32.mxu0 %vm266_vm0, %v253_v26 }
  0xf1   :  { %v254_v30 = vmax.f32 %v250_v29, 0.0 }
  0xf3   :  { %711 = vmatmul.mubr.msk.f32.vlgmr.msra.gmra.mxu0 %vm266_vm0, %v254_v30 }
 0x1b3   :  { %v712_v38 = vpop.f32.mrf.mxu0 }
 0x1b4   :  { %v345_v39 = vadd.f32 %v712_v38, %v616_v36 }
 0x1b5   :  { %v339_v40 = vpop.f32.mrf.mxu0 }
 0x1b6   :  { %v401_v41 = vcombine.high %v345_v39, %v345_v39  ;;  %v408_v42 = vrot.slane %v345_v39, %v1022_v37  ;;  %v340_v43 = vadd.f32 %v616_v36, %v339_v40 }
 0x1b8   :  { %v415_v45 = vrot.slane %v401_v41, %v1022_v37  ;;  %v416_v46 = vcombine.high %v408_v42, %v408_v42  ;;  %v424_v47 = vrot.slane %v408_v42, %v1022_v37  ;;  %v352_v48 = vcombine.high %v340_v43, %v340_v43 }
 0x1b9   :  { %v359_v49 = vrot.slane %v340_v43, %v1022_v37 }
 0x1ba   :  { %v417_v52 = vcombine.high %v415_v45, %v415_v45  ;;  %v431_v53 = vrot.slane %v415_v45, %v1022_v37  ;;  %v438_v54 = vrot.slane %v416_v46, %v1022_v37  ;;  %v446_v55 = vcombine.high %v424_v47, %v424_v47 }
 0x1bb   :  { %v485_v56 = vrot.slane %v424_v47, %v1025_v44  ;;  %v366_v57 = vrot.slane %v352_v48, %v1022_v37  ;;  %v367_v58 = vcombine.high %v359_v49, %v359_v49  ;;  %v375_v59 = vrot.slane %v359_v49, %v1022_v37 }
 0x1bc   :  { %v445_v60 = vrot.slane %v417_v52, %v1022_v37  ;;  %v447_v61 = vcombine.high %v431_v53, %v431_v53  ;;  %v448_v62 = vcombine.high %v438_v54, %v438_v54  ;;  %v489_v63 = vrot.slane %v438_v54, %v1025_v44 }
 0x1bd   :  { %v493_v0 = vrot.slane %v446_v55, %v1025_v44  ;;  %v501_v1 = vrot.slane %v431_v53, %v1025_v44  ;;  %v546_v2 = vadd.f32 %v485_v56, %v1033_v50  ;;  %v547_v3 = vadd.f32 %v485_v56, %v1038_v51 }
 0x1be   :  { %v449_v4 = vcombine.high %v445_v60, %v445_v60  ;;  %v497_v5 = vrot.slane %v448_v62, %v1025_v44  ;;  %v505_v6 = vrot.slane %v445_v60, %v1025_v44  ;;  %v509_v7 = vrot.slane %v447_v61, %v1025_v44 }
 0x1bf   :  { %v548_v8 = vadd.f32 %v489_v63, %v1033_v50  ;;  %v549_v9 = vadd.f32 %v489_v63, %v1038_v51  ;;  %v550_v10 = vadd.f32 %v493_v0, %v1033_v50  ;;  %v551_v11 = vadd.f32 %v493_v0, %v1038_v51  ;;  %578 = vst [vmem:[#allocation2 + $0x80] sm:$0xff] %v546_v2 }
 0x1c0   :  { %579 = vst [vmem:[#allocation2 + $0x88] sm:$0xff] %v547_v3  ;;  %v513_v12 = vrot.slane %v449_v4, %v1025_v44  ;;  %v552_v13 = vadd.f32 %v497_v5, %v1033_v50  ;;  %v553_v14 = vadd.f32 %v497_v5, %v1038_v51  ;;  %v554_v15 = vadd.f32 %v501_v1, %v1033_v50 }
 0x1c1   :  { %v555_v16 = vadd.f32 %v501_v1, %v1038_v51  ;;  %v556_v17 = vadd.f32 %v505_v6, %v1033_v50  ;;  %v557_v18 = vadd.f32 %v505_v6, %v1038_v51  ;;  %v558_v19 = vadd.f32 %v509_v7, %v1033_v50  ;;  %580 = vst [vmem:[#allocation2 + $0x90] sm:$0xff] %v548_v8 }
 0x1c2   :  { %581 = vst [vmem:[#allocation2 + $0x98] sm:$0xff] %v549_v9  ;;  %582 = vst [vmem:[#allocation2 + $0xa0] sm:$0xff] %v550_v10  ;;  %v559_v20 = vadd.f32 %v509_v7, %v1038_v51  ;;  %v560_v21 = vadd.f32 %v513_v12, %v1033_v50  ;;  %v561_v22 = vadd.f32 %v513_v12, %v1038_v51 }
 0x1c3   :  { %583 = vst [vmem:[#allocation2 + $0xa8] sm:$0xff] %v551_v11  ;;  %584 = vst [vmem:[#allocation2 + $0xb0] sm:$0xff] %v552_v13  ;;  %v368_v23 = vcombine.high %v366_v57, %v366_v57  ;;  %v382_v24 = vrot.slane %v366_v57, %v1022_v37  ;;  %v389_v25 = vrot.slane %v367_v58, %v1022_v37 }
 0x1c4   :  { %585 = vst [vmem:[#allocation2 + $0xb8] sm:$0xff] %v553_v14  ;;  %586 = vst [vmem:[#allocation2 + $0xc0] sm:$0xff] %v554_v15  ;;  %v397_v26 = vcombine.high %v375_v59, %v375_v59  ;;  %v453_v27 = vrot.slane %v375_v59, %v1025_v44 }
 0x1c5   :  { %587 = vst [vmem:[#allocation2 + $0xc8] sm:$0xff] %v555_v16  ;;  %588 = vst [vmem:[#allocation2 + $0xd0] sm:$0xff] %v556_v17  ;;  %v396_v28 = vrot.slane %v368_v23, %v1022_v37  ;;  %v398_v29 = vcombine.high %v382_v24, %v382_v24  ;;  %v399_v30 = vcombine.high %v389_v25, %v389_v25 }
 0x1c6   :  { %589 = vst [vmem:[#allocation2 + $0xd8] sm:$0xff] %v557_v18  ;;  %590 = vst [vmem:[#allocation2 + $0xe0] sm:$0xff] %v558_v19  ;;  %v457_v31 = vrot.slane %v389_v25, %v1025_v44  ;;  %v461_v32 = vrot.slane %v397_v26, %v1025_v44  ;;  %v469_v34 = vrot.slane %v382_v24, %v1025_v44 }
 0x1c7   :  { %591 = vst [vmem:[#allocation2 + $0xe8] sm:$0xff] %v559_v20  ;;  %592 = vst [vmem:[#allocation2 + $0xf0] sm:$0xff] %v560_v21  ;;  %v400_v33 = vcombine.high %v396_v28, %v396_v28  ;;  %v473_v35 = vrot.slane %v396_v28, %v1025_v44  ;;  %v530_v36 = vadd.f32 %v453_v27, %v1033_v50 }
 0x1c8   :  { %593 = vst [vmem:[#allocation2 + $0xf8] sm:$0xff] %v561_v22  ;;  %v465_v38 = vrot.slane %v399_v30, %v1025_v44  ;;  %v477_v39 = vrot.slane %v398_v29, %v1025_v44  ;;  %v531_v40 = vadd.f32 %v453_v27, %v1038_v51  ;;  %v532_v37 = vadd.f32 %v457_v31, %v1033_v50 }
 0x1c9   :  { %v481_v41 = vrot.slane %v400_v33, %v1025_v44  ;;  %v533_v42 = vadd.f32 %v457_v31, %v1038_v51  ;;  %v534_v43 = vadd.f32 %v461_v32, %v1033_v50  ;;  %v535_v45 = vadd.f32 %v461_v32, %v1038_v51  ;;  %562 = vst [vmem:[#allocation2] sm:$0xff] %v530_v36 }
 0x1ca   :  { %v536_v46 = vadd.f32 %v465_v38, %v1033_v50  ;;  %v537_v47 = vadd.f32 %v465_v38, %v1038_v51  ;;  %v538_v48 = vadd.f32 %v469_v34, %v1033_v50  ;;  %v539_v49 = vadd.f32 %v469_v34, %v1038_v51  ;;  %563 = vst [vmem:[#allocation2 + $0x8] sm:$0xff] %v531_v40 }
 0x1cb   :  { %564 = vst [vmem:[#allocation2 + $0x10] sm:$0xff] %v532_v37  ;;  %v540_v52 = vadd.f32 %v473_v35, %v1033_v50  ;;  %v541_v44 = vadd.f32 %v473_v35, %v1038_v51  ;;  %v542_v53 = vadd.f32 %v477_v39, %v1033_v50  ;;  %v543_v54 = vadd.f32 %v477_v39, %v1038_v51 }
 0x1cc   :  { %565 = vst [vmem:[#allocation2 + $0x18] sm:$0xff] %v533_v42  ;;  %566 = vst [vmem:[#allocation2 + $0x20] sm:$0xff] %v534_v43  ;;  %v544_v55 = vadd.f32 %v481_v41, %v1033_v50  ;;  %v545_v56 = vadd.f32 %v481_v41, %v1038_v51 }
 0x1cd   :  { %567 = vst [vmem:[#allocation2 + $0x28] sm:$0xff] %v535_v45  ;;  %568 = vst [vmem:[#allocation2 + $0x30] sm:$0xff] %v536_v46 }
 0x1ce   :  { %569 = vst [vmem:[#allocation2 + $0x38] sm:$0xff] %v537_v47  ;;  %570 = vst [vmem:[#allocation2 + $0x40] sm:$0xff] %v538_v48 }
 0x1cf   :  { %571 = vst [vmem:[#allocation2 + $0x48] sm:$0xff] %v539_v49  ;;  %572 = vst [vmem:[#allocation2 + $0x50] sm:$0xff] %v540_v52 }
 0x1d0   :  { %573 = vst [vmem:[#allocation2 + $0x58] sm:$0xff] %v541_v44  ;;  %574 = vst [vmem:[#allocation2 + $0x60] sm:$0xff] %v542_v53 }
 0x1d1   :  { %575 = vst [vmem:[#allocation2 + $0x68] sm:$0xff] %v543_v54  ;;  %576 = vst [vmem:[#allocation2 + $0x70] sm:$0xff] %v544_v55 }
 0x1d2   :  { %577 = vst [vmem:[#allocation2 + $0x78] sm:$0xff] %v545_v56 }
 0x1d3   :  { %729 = shalt.err (!%p726_p4)  }
 0x1d4   :  { %s745_s7 = smov 256   ;;  %s746_s16 = smov 512  }
 0x1d5   :  { %s747_s17 = smov 16  }
 0x1d6   :  { %603 = dma.vmem_to_hbm [thread:$0]  %s601_s11, 4096, %s614_s14, [#allocation3], %s745_s7, %s746_s16, %s747_s17 }
 0x1d7   :  { %741 = dma.done.wait [#allocation3], 4096 }
 0x1d8   :  { %742 = vsyncadd [#allocation3], 4294963200 }
 0x1d9   :  { %608 = vsyncmov [#allocation3] }
 0x1dc   :  { %s609_s1 = vpop.sfrf %608 }
 0x1dd   :  { %p619_p5 = scmp.ne.s32.totalorder %s609_s1, 0 }
 0x1df   :  { %613 = shalt.err (%p619_p5)  }

</bundles_post_ra>
